<compile_context>
chip_gen: v7x
topology: tpu7x:2x2x1
jax: 0.10.0
libtpu: 0.0.40
codegen_flags: <defaults>
</compile_context>

<pallas_src>
import functools
import math

import jax
import jax.numpy as jnp
import numpy as np
from jax import lax
from jax.experimental import pallas as pl
from jax.experimental.pallas import tpu as pltpu


def _round_up(x, m):
    return (x + m - 1) // m * m


# ---------------------------------------------------------------------------
# Kernel
# ---------------------------------------------------------------------------
def se_out_kernel(rgb_ref, hha_ref, par_ref, out_ref, *, sec, inv_hw):
    """One grid step: (Bt, C, HW) tiles of rgb / hha -> merged output tile.

    Param slab layout (f32, C columns, every section 8-row aligned):
      rows [0,       sec)   : W1_top^T (2h x C)  -- contracts with mean_hha
      rows [sec,   2*sec)   : W1_bot^T (2h x C)  -- contracts with mean_rgb
      rows [2*sec, 3*sec)   : W2_rgb   (2h x C)  (rows >= h are zero)
      rows [3*sec, 4*sec)   : W2_hha   (2h x C)  (rows <  h are zero)
      rows [4*sec, 4*sec+8) : vec block: b1 | b2r | b2h | dr | dh | db | 0 | 0
    """
    f32 = jnp.float32
    hi = lax.Precision.HIGHEST          # tiny FC dots only; big path never uses MXU

    x = rgb_ref[...]                    # (Bt, C, HW) in the I/O dtype (f32 or bf16)
    y = hha_ref[...]

    # -- AdaptiveAvgPool2d(1): per-channel spatial means, f32 accumulation --
    mean_rgb = jnp.sum(x, axis=2, dtype=f32) * inv_hw            # (Bt, C)
    mean_hha = jnp.sum(y, axis=2, dtype=f32) * inv_hw            # (Bt, C)

    # -- parameter slab sections (static, 8-row-aligned ref slices) --
    w1_top = par_ref[0 * sec:1 * sec, :]                         # (sec, C)
    w1_bot = par_ref[1 * sec:2 * sec, :]
    w2_rgb = par_ref[2 * sec:3 * sec, :]
    w2_hha = par_ref[3 * sec:4 * sec, :]
    vec = par_ref[4 * sec:4 * sec + 8, :]                        # (8, C)
    b1 = vec[0:1, 0:sec]                                         # (1, sec)
    b2r = vec[1:2, :]                                            # (1, C)
    b2h = vec[2:3, :]
    dr = vec[3:4, :]            # gate_rgb - gate_hha weights, rec_rgb part
    dh = vec[4:5, :]            # gate_rgb - gate_hha weights, rec_hha part
    db = vec[5:6, 0:1]          # gate bias difference (scalar)

    # -- fused squeeze-excitation FCs of both FSP branches (tiny MXU dots) --
    nt = (((1,), (1,)), ((), ()))       # contract channel axes (A @ B.T)
    h_all = jnp.maximum(
        lax.dot_general(mean_hha, w1_top, nt, preferred_element_type=f32, precision=hi)
        + lax.dot_general(mean_rgb, w1_bot, nt, preferred_element_type=f32, precision=hi)
        + b1,
        0.0)                                                     # (Bt, sec) = [h_rgb|h_hha|0]
    w_rgb = jax.nn.sigmoid(
        jnp.dot(h_all, w2_rgb, preferred_element_type=f32, precision=hi) + b2r)  # (Bt, C)
    w_hha = jax.nn.sigmoid(
        jnp.dot(h_all, w2_hha, preferred_element_type=f32, precision=hi) + b2h)  # (Bt, C)

    # -- gate logit difference with the FSP recalibration folded in (pure VPU) --
    #    a_l - a_r = (dr + dh*w_hha)·rgb + (dh + dr*w_rgb)·hha + db
    coef_rgb = dr + dh * w_hha                                   # (Bt, C) f32
    coef_hha = dh + dr * w_rgb                                   # (Bt, C) f32
    diff = jnp.sum(coef_rgb[:, :, None] * x + coef_hha[:, :, None] * y,
                   axis=1, keepdims=True) + db[:, :, None]       # (Bt, 1, HW) f32

    # -- softmax over 2 maps == sigmoid of the difference; fused merge + ReLU --
    att = jax.nn.sigmoid(diff).astype(x.dtype)                   # (Bt, 1, HW)
    out_ref[...] = jnp.maximum(y + att * (x - y), 0).astype(out_ref.dtype)


# ---------------------------------------------------------------------------
# Host-side parameter packing: one compact (4*sec + 8, C) f32 slab, one DMA
# ---------------------------------------------------------------------------
def pack_params(params, c, hidden):
    h2 = 2 * hidden
    sec = _round_up(h2, 8)
    assert sec <= c, "requires round_up(2 * out_planes // reduction, 8) <= channels"
    f32 = jnp.float32

    w1r, b1r, w2r, b2r = (params[k].astype(f32) for k in ("w1r", "b1r", "w2r", "b2r"))
    w1h, b1h, w2h, b2h = (params[k].astype(f32) for k in ("w1h", "b1h", "w2h", "b2h"))
    grw, grb, ghw, ghb = (params[k].astype(f32) for k in ("grw", "grb", "ghw", "ghb"))

    # Fused layer-1 weights, stored TRANSPOSED (rows = [h_rgb | h_hha] features).
    # fsp_rgb sees cat(hha_mean, rgb_mean); fsp_hha sees cat(rgb_mean, hha_mean).
    w1_top = jnp.concatenate([w1r[:, :c], w1h[:, c:]], axis=0)          # (2h, C) x mean_hha
    w1_bot = jnp.concatenate([w1r[:, c:], w1h[:, :c]], axis=0)          # (2h, C) x mean_rgb
    # Layer-2: block rows so h_hha never feeds w_rgb and vice versa.
    w2_rgb_f = jnp.concatenate([w2r.T, jnp.zeros((hidden, c), f32)], axis=0)   # (2h, C)
    w2_hha_f = jnp.concatenate([jnp.zeros((hidden, c), f32), w2h.T], axis=0)   # (2h, C)
    b1_all = jnp.concatenate([b1r[:, 0], b1h[:, 0]])                           # (2h,)
    # Gate difference: softmax over 2 maps only depends on a_l - a_r.
    dr = grw[0, :c] - ghw[0, :c]
    dh = grw[0, c:] - ghw[0, c:]
    db = (grb - ghb).reshape(())

    def pad_rows(m, rows):
        return jnp.pad(m, ((0, rows - m.shape[0]), (0, 0)))

    vec_rows = jnp.stack([
        jnp.pad(b1_all, (0, c - h2)),
        b2r[:, 0],
        b2h[:, 0],
        dr,
        dh,
        jnp.zeros((c,), f32).at[0].set(db),
        jnp.zeros((c,), f32),
        jnp.zeros((c,), f32),
    ], axis=0)                                                          # (8, C)

    return jnp.concatenate([
        pad_rows(w1_top, sec),
        pad_rows(w1_bot, sec),
        pad_rows(w2_rgb_f, sec),
        pad_rows(w2_hha_f, sec),
        vec_rows,
    ], axis=0)                                                          # (4*sec + 8, C)


# ---------------------------------------------------------------------------
# Wrapper
# ---------------------------------------------------------------------------
def _vmem_capacity_bytes():
    """Physical per-core VMEM; conservative (v7x, 64 MiB) default if query fails."""
    try:
        cap = getattr(pltpu.get_tpu_info(), "vmem_capacity_bytes", None)
        if cap:
            return int(cap)
    except Exception:
        pass
    return 64 << 20


def _choose_block_batch(b, c, hw, itemsize, slab_bytes, vmem_budget):
    """Pick bt | b: fit VMEM, ~1 MiB input blocks, >=4 (preferably even) grid steps."""
    lane = _round_up(hw, 128)           # VMEM layout pads the lane dim
    subl = _round_up(c, 8)
    best, best_score = None, None
    for bt in range(1, b + 1):
        if b % bt:
            continue
        blk_elems = bt * subl * lane
        io_bytes = blk_elems * itemsize
        # 3 pipelined arrays x 2 buffers + ~3 f32 full-tile temporaries + 2x slab.
        need = 6 * io_bytes + 3 * blk_elems * 4 + 2 * slab_bytes
        if need > vmem_budget:
            continue
        steps = b // bt
        size_pen = abs(math.log2(max(io_bytes, 1) / float(1 << 20)))   # sweet spot ~1 MiB
        step_pen = float(max(0, 4 - steps))                            # want pipelining
        even_pen = 0.0 if (steps % 2 == 0 or steps >= 8) else 0.5      # v7x 2-TC balance
        score = size_pen + step_pen + even_pen
        if best_score is None or score < best_score:
            best, best_score = bt, score
    if best is None:
        # TODO(synk): two-pass fallback (stats kernel + HW-tiled apply kernel) for
        # configurations where even a single-batch block exceeds VMEM (v7x, huge C*H*W).
        raise ValueError("SE_OUT: single-batch block does not fit the VMEM budget")
    return best


def se_out_pallas(rgb, hha, params, *, block_batch=None):
    """rgb, hha: (B, C, H, W) NCHW like the PyTorch module (float32 or bfloat16)."""
    B, C, H, W = rgb.shape
    assert hha.shape == rgb.shape and hha.dtype == rgb.dtype
    hidden = params["w2r"].shape[1]
    assert hidden >= 1 and params["w2r"].shape[0] == C, \
        "SE_OUT requires out_planes == in_planes and out_planes >= reduction"
    HW = H * W

    rgb2 = rgb.reshape(B, C, HW)        # contiguous reshape: no extra HBM traffic
    hha2 = hha.reshape(B, C, HW)
    slab = pack_params(params, C, hidden)
    sec = _round_up(2 * hidden, 8)

    cap = _vmem_capacity_bytes()
    budget = max(32 << 20, min(cap * 7 // 10, 100 << 20))

    bt = block_batch if block_batch is not None else _choose_block_batch(
        B, C, HW, rgb2.dtype.itemsize, slab.size * 4, budget)
    assert B % bt == 0

    # Last block dim equals the full HW -> exempt from the 128-lane rule, so no padding.
    img_spec = pl.BlockSpec((bt, C, HW), lambda b: (b, 0, 0))
    # Constant index map: the slab is DMA'd once; the second pipeline buffer only
    # costs ~slab-size of VMEM (slab is now O(C*h), not O(C^2)).
    par_spec = pl.BlockSpec(slab.shape, lambda b: (0, 0))

    kernel = functools.partial(se_out_kernel, sec=sec, inv_hw=1.0 / HW)

    out = pl.pallas_call(
        kernel,
        out_shape=jax.ShapeDtypeStruct((B, C, HW), rgb.dtype),
        grid=(B // bt,),
        in_specs=[img_spec, img_spec, par_spec],
        out_specs=img_spec,
        compiler_params=pltpu.CompilerParams(
            dimension_semantics=("parallel",),
            vmem_limit_bytes=int(budget)),
    )(rgb2, hha2, slab)
    return out.reshape(B, C, H, W)


# ---------------------------------------------------------------------------
# Pure-JAX reference (direct replica of the PyTorch forward) + params
# ---------------------------------------------------------------------------
def se_out_reference(rgb, hha, params):
    hi = lax.Precision.HIGHEST

    def filt(guide_mean, main_mean, w1, b1, w2, b2):
        comb = jnp.concatenate([guide_mean, main_mean], axis=1)          # (B, 2C)
        h = jax.nn.relu(jnp.dot(comb, w1.T, precision=hi) + b1[:, 0])
        return jax.nn.sigmoid(jnp.dot(h, w2.T, precision=hi) + b2[:, 0])  # (B, C)

    mean_rgb = rgb.mean(axis=(2, 3))
    mean_hha = hha.mean(axis=(2, 3))
    w_rgb = filt(mean_hha, mean_rgb, params["w1r"], params["b1r"],
                 params["w2r"], params["b2r"])[:, :, None, None]
    w_hha = filt(mean_rgb, mean_hha, params["w1h"], params["b1h"],
                 params["w2h"], params["b2h"])[:, :, None, None]
    rec_rgb = rgb + w_rgb * hha
    rec_hha = hha + w_hha * rgb
    cat = jnp.concatenate([rec_rgb, rec_hha], axis=1)                    # (B, 2C, H, W)
    a_l = jnp.einsum("bchw,c->bhw", cat, params["grw"][0], precision=hi) + params["grb"][0, 0]
    a_r = jnp.einsum("bchw,c->bhw", cat, params["ghw"][0], precision=hi) + params["ghb"][0, 0]
    att = jax.nn.softmax(jnp.stack([a_l, a_r], axis=1), axis=1)
    merge = rgb * att[:, 0:1] + hha * att[:, 1:2]
    return jax.nn.relu(merge)


def make_params(key, in_planes, out_planes, reduction=16):
    hidden = out_planes // reduction
    ks = jax.random.split(key, 12)
    s = 0.1
    return {
        # fsp_rgb.filter.fc : Linear(2C -> hidden), Linear(hidden -> C)
        "w1r": s * jax.random.normal(ks[0], (hidden, 2 * in_planes), jnp.float32),
        "b1r": s * jax.random.normal(ks[1], (hidden, 1), jnp.float32),
        "w2r": s * jax.random.normal(ks[2], (out_planes, hidden), jnp.float32),
        "b2r": s * jax.random.normal(ks[3], (out_planes, 1), jnp.float32),
        # fsp_hha.filter.fc
        "w1h": s * jax.random.normal(ks[4], (hidden, 2 * in_planes), jnp.float32),
        "b1h": s * jax.random.normal(ks[5], (hidden, 1), jnp.float32),
        "w2h": s * jax.random.normal(ks[6], (out_planes, hidden), jnp.float32),
        "b2h": s * jax.random.normal(ks[7], (out_planes, 1), jnp.float32),
        # gate_rgb / gate_hha : Conv2d(2C, 1, 1) -> (1, 2C) weight + (1, 1) bias
        "grw": s * jax.random.normal(ks[8], (1, 2 * in_planes), jnp.float32),
        "grb": s * jax.random.normal(ks[9], (1, 1), jnp.float32),
        "ghw": s * jax.random.normal(ks[10], (1, 2 * in_planes), jnp.float32),
        "ghb": s * jax.random.normal(ks[11], (1, 1), jnp.float32),
    }


if __name__ == "__main__":
    # SE_OUT requires out_planes == in_planes and in_planes // reduction >= 1.
    B, C, H, W = 2, 32, 16, 16
    key = jax.random.PRNGKey(0)
    k_rgb, k_hha, k_par = jax.random.split(key, 3)

    rgb = jax.random.normal(k_rgb, (B, C, H, W), jnp.float32)
    hha = jax.random.normal(k_hha, (B, C, H, W), jnp.float32)
    params = make_params(k_par, C, C, reduction=16)

    # float32 I/O path — tight check against the pure-JAX reference.
    out_f32 = jax.block_until_ready(se_out_pallas(rgb, hha, params))
    ref_f32 = jax.block_until_ready(se_out_reference(rgb, hha, params))
    np.testing.assert_allclose(np.asarray(out_f32), np.asarray(ref_f32),
                               atol=1e-4, rtol=1e-4)

    # bfloat16 I/O path (elementwise merge stays bf16 in-kernel; f32 stats/logits).
    rgb_bf = rgb.astype(jnp.bfloat16)
    hha_bf = hha.astype(jnp.bfloat16)
    out_bf = jax.block_until_ready(se_out_pallas(rgb_bf, hha_bf, params))
    ref_bf = se_out_reference(rgb_bf.astype(jnp.float32),
                              hha_bf.astype(jnp.float32), params)
    np.testing.assert_allclose(np.asarray(out_bf.astype(jnp.float32)),
                               np.asarray(ref_bf), atol=5e-2, rtol=5e-2)

    print("KERNEL_OK")
</pallas_src>

<mosaic_0001>
module attributes {stable_mosaic.version = 11 : i64} {
  func.func @se_out_kernel(%arg0: i32, %arg1: memref<1x32x256xf32, #tpu.memory_space<vmem>>, %arg2: memref<1x32x256xf32, #tpu.memory_space<vmem>>, %arg3: memref<40x32xf32, #tpu.memory_space<vmem>>, %arg4: memref<1x32x256xf32, #tpu.memory_space<vmem>>) attributes {dimension_semantics = [#tpu.dimension_semantics<parallel>], iteration_bounds = array<i64: 2>, scalar_prefetch = 0 : i64, scratch_operands = 0 : i64, tpu.core_type = #tpu.core_type<tc>, window_params = [{transform_indices = @transform_0, window_bounds = array<i64: 1, 32, 256>}, {transform_indices = @transform_1, window_bounds = array<i64: 1, 32, 256>}, {pipeline_mode = #tpu.pipeline_mode<synchronous>, transform_indices = @transform_2, window_bounds = array<i64: 40, 32>}, {transform_indices = @transform_3, window_bounds = array<i64: 1, 32, 256>}]} {
    %c0 = arith.constant 0 : index
    %c0_0 = arith.constant 0 : index
    %c0_1 = arith.constant 0 : index
    %0 = vector.load %arg1[%c0, %c0_0, %c0_1] : memref<1x32x256xf32, #tpu.memory_space<vmem>>, vector<1x32x256xf32>
    %c0_2 = arith.constant 0 : index
    %c0_3 = arith.constant 0 : index
    %c0_4 = arith.constant 0 : index
    %1 = vector.load %arg2[%c0_2, %c0_3, %c0_4] : memref<1x32x256xf32, #tpu.memory_space<vmem>>, vector<1x32x256xf32>
    %cst = arith.constant dense<0.000000e+00> : vector<1x32xf32>
    %2 = vector.multi_reduction <add>, %0, %cst [2] : vector<1x32x256xf32> to vector<1x32xf32>
    %cst_5 = arith.constant 3.906250e-03 : f32
    %3 = vector.broadcast %cst_5 : f32 to vector<1x32xf32>
    %4 = arith.mulf %2, %3 : vector<1x32xf32>
    %cst_6 = arith.constant dense<0.000000e+00> : vector<1x32xf32>
    %5 = vector.multi_reduction <add>, %1, %cst_6 [2] : vector<1x32x256xf32> to vector<1x32xf32>
    %cst_7 = arith.constant 3.906250e-03 : f32
    %6 = vector.broadcast %cst_7 : f32 to vector<1x32xf32>
    %7 = arith.mulf %5, %6 : vector<1x32xf32>
    %c0_8 = arith.constant 0 : index
    %c0_9 = arith.constant 0 : index
    %8 = vector.load %arg3[%c0_8, %c0_9] : memref<40x32xf32, #tpu.memory_space<vmem>>, vector<8x32xf32>
    %c8 = arith.constant 8 : index
    %c0_10 = arith.constant 0 : index
    %9 = vector.load %arg3[%c8, %c0_10] : memref<40x32xf32, #tpu.memory_space<vmem>>, vector<8x32xf32>
    %c16 = arith.constant 16 : index
    %c0_11 = arith.constant 0 : index
    %10 = vector.load %arg3[%c16, %c0_11] : memref<40x32xf32, #tpu.memory_space<vmem>>, vector<8x32xf32>
    %c24 = arith.constant 24 : index
    %c0_12 = arith.constant 0 : index
    %11 = vector.load %arg3[%c24, %c0_12] : memref<40x32xf32, #tpu.memory_space<vmem>>, vector<8x32xf32>
    %c32 = arith.constant 32 : index
    %c0_13 = arith.constant 0 : index
    %12 = vector.load %arg3[%c32, %c0_13] : memref<40x32xf32, #tpu.memory_space<vmem>>, vector<8x32xf32>
    %13 = vector.extract_strided_slice %12 {offsets = [0, 0], sizes = [1, 8], strides = [1, 1]} : vector<8x32xf32> to vector<1x8xf32>
    %14 = vector.extract_strided_slice %12 {offsets = [1, 0], sizes = [1, 32], strides = [1, 1]} : vector<8x32xf32> to vector<1x32xf32>
    %15 = vector.extract_strided_slice %12 {offsets = [2, 0], sizes = [1, 32], strides = [1, 1]} : vector<8x32xf32> to vector<1x32xf32>
    %16 = vector.extract_strided_slice %12 {offsets = [3, 0], sizes = [1, 32], strides = [1, 1]} : vector<8x32xf32> to vector<1x32xf32>
    %17 = vector.extract_strided_slice %12 {offsets = [4, 0], sizes = [1, 32], strides = [1, 1]} : vector<8x32xf32> to vector<1x32xf32>
    %18 = vector.extract_strided_slice %12 {offsets = [5, 0], sizes = [1, 1], strides = [1, 1]} : vector<8x32xf32> to vector<1x1xf32>
    %cst_14 = arith.constant dense<0.000000e+00> : vector<1x8xf32>
    %19 = tpu.matmul %7, %8, %cst_14 {dimension_numbers = #tpu.dot_dimension_numbers<[1], [1], [0], [0], [0, 0, 1, 0], [], []>, precision = #tpu.contract_precision<fp32>} : vector<1x32xf32>, vector<8x32xf32>, vector<1x8xf32> -> vector<1x8xf32>
    %cst_15 = arith.constant dense<0.000000e+00> : vector<1x8xf32>
    %20 = tpu.matmul %4, %9, %cst_15 {dimension_numbers = #tpu.dot_dimension_numbers<[1], [1], [0], [0], [0, 0, 1, 0], [], []>, precision = #tpu.contract_precision<fp32>} : vector<1x32xf32>, vector<8x32xf32>, vector<1x8xf32> -> vector<1x8xf32>
    %21 = arith.addf %19, %20 : vector<1x8xf32>
    %22 = arith.addf %21, %13 : vector<1x8xf32>
    %cst_16 = arith.constant 0.000000e+00 : f32
    %23 = vector.broadcast %cst_16 : f32 to vector<1x8xf32>
    %24 = arith.maximumf %22, %23 : vector<1x8xf32>
    %cst_17 = arith.constant dense<0.000000e+00> : vector<1x32xf32>
    %25 = tpu.matmul %24, %10, %cst_17 {dimension_numbers = #tpu.dot_dimension_numbers<[1], [0], [0], [1], [0, 0, 1, 1], [], []>, precision = #tpu.contract_precision<fp32>} : vector<1x8xf32>, vector<8x32xf32>, vector<1x32xf32> -> vector<1x32xf32>
    %26 = arith.addf %25, %14 : vector<1x32xf32>
    %27 = arith.negf %26 : vector<1x32xf32>
    %28 = math.exp %27 : vector<1x32xf32>
    %cst_18 = arith.constant 1.000000e+00 : f32
    %29 = vector.broadcast %cst_18 : f32 to vector<1x32xf32>
    %30 = arith.addf %29, %28 : vector<1x32xf32>
    %31 = arith.divf %29, %30 : vector<1x32xf32>
    %cst_19 = arith.constant dense<0.000000e+00> : vector<1x32xf32>
    %32 = tpu.matmul %24, %11, %cst_19 {dimension_numbers = #tpu.dot_dimension_numbers<[1], [0], [0], [1], [0, 0, 1, 1], [], []>, precision = #tpu.contract_precision<fp32>} : vector<1x8xf32>, vector<8x32xf32>, vector<1x32xf32> -> vector<1x32xf32>
    %33 = arith.addf %32, %15 : vector<1x32xf32>
    %34 = arith.negf %33 : vector<1x32xf32>
    %35 = math.exp %34 : vector<1x32xf32>
    %cst_20 = arith.constant 1.000000e+00 : f32
    %36 = vector.broadcast %cst_20 : f32 to vector<1x32xf32>
    %37 = arith.addf %36, %35 : vector<1x32xf32>
    %38 = arith.divf %36, %37 : vector<1x32xf32>
    %39 = arith.mulf %17, %38 : vector<1x32xf32>
    %40 = arith.addf %16, %39 : vector<1x32xf32>
    %41 = arith.mulf %16, %31 : vector<1x32xf32>
    %42 = arith.addf %17, %41 : vector<1x32xf32>
    %43 = vector.shape_cast %40 : vector<1x32xf32> to vector<1x32x1xf32>
    %44 = vector.broadcast %43 : vector<1x32x1xf32> to vector<1x32x256xf32>
    %45 = arith.mulf %44, %0 : vector<1x32x256xf32>
    %46 = vector.shape_cast %42 : vector<1x32xf32> to vector<1x32x1xf32>
    %47 = vector.broadcast %46 : vector<1x32x1xf32> to vector<1x32x256xf32>
    %48 = arith.mulf %47, %1 : vector<1x32x256xf32>
    %49 = arith.addf %45, %48 : vector<1x32x256xf32>
    %cst_21 = arith.constant dense<0.000000e+00> : vector<1x256xf32>
    %50 = vector.multi_reduction <add>, %49, %cst_21 [1] : vector<1x32x256xf32> to vector<1x256xf32>
    %51 = vector.shape_cast %50 : vector<1x256xf32> to vector<1x1x256xf32>
    %52 = vector.shape_cast %18 : vector<1x1xf32> to vector<1x1x1xf32>
    %53 = vector.broadcast %52 : vector<1x1x1xf32> to vector<1x1x256xf32>
    %54 = arith.addf %51, %53 : vector<1x1x256xf32>
    %55 = arith.negf %54 : vector<1x1x256xf32>
    %56 = math.exp %55 : vector<1x1x256xf32>
    %cst_22 = arith.constant 1.000000e+00 : f32
    %57 = vector.broadcast %cst_22 : f32 to vector<1x1x256xf32>
    %58 = arith.addf %57, %56 : vector<1x1x256xf32>
    %59 = arith.divf %57, %58 : vector<1x1x256xf32>
    %60 = arith.subf %0, %1 : vector<1x32x256xf32>
    %61 = vector.broadcast %59 : vector<1x1x256xf32> to vector<1x32x256xf32>
    %62 = arith.mulf %61, %60 : vector<1x32x256xf32>
    %63 = arith.addf %1, %62 : vector<1x32x256xf32>
    %cst_23 = arith.constant 0.000000e+00 : f32
    %64 = vector.broadcast %cst_23 : f32 to vector<1x32x256xf32>
    %65 = arith.maximumf %63, %64 : vector<1x32x256xf32>
    %c0_24 = arith.constant 0 : index
    %c0_25 = arith.constant 0 : index
    %c0_26 = arith.constant 0 : index
    %66 = vector.load %arg4[%c0_24, %c0_25, %c0_26] : memref<1x32x256xf32, #tpu.memory_space<vmem>>, vector<1x32x256xf32>
    tpu.vector_store %arg4[%c0_24, %c0_25, %c0_26], %65 {strides = array<i32>} : memref<1x32x256xf32, #tpu.memory_space<vmem>>, vector<1x32x256xf32>,
    return
  }
  func.func @transform_0(%arg0: i32) -> (i32, i32, i32) {
    %c0_i32 = arith.constant 0 : i32
    %c0_i32_0 = arith.constant 0 : i32
    %c0_i32_1 = arith.constant 0 : i32
    return %arg0, %c0_i32, %c0_i32_0 : i32, i32, i32
  }
  func.func @transform_1(%arg0: i32) -> (i32, i32, i32) {
    %c0_i32 = arith.constant 0 : i32
    %c0_i32_0 = arith.constant 0 : i32
    %c0_i32_1 = arith.constant 0 : i32
    return %arg0, %c0_i32, %c0_i32_0 : i32, i32, i32
  }
  func.func @transform_2(%arg0: i32) -> (i32, i32) {
    %c0_i32 = arith.constant 0 : i32
    %c0_i32_0 = arith.constant 0 : i32
    %c0_i32_1 = arith.constant 0 : i32
    return %c0_i32, %c0_i32_0 : i32, i32
  }
  func.func @transform_3(%arg0: i32) -> (i32, i32, i32) {
    %c0_i32 = arith.constant 0 : i32
    %c0_i32_0 = arith.constant 0 : i32
    %c0_i32_1 = arith.constant 0 : i32
    return %arg0, %c0_i32, %c0_i32_0 : i32, i32, i32
  }
}

</mosaic_0001>

<bundles_post_ra>
// kernel: tpu_custom_call.1
= control target key start
LH: loop header
LB: loop body
LE: loop exit
PB: predicated region body
PF: predicated region fallthrough
CT: control target
= control target key end

     0   :  { %8 = vsyncpa [#allocation3], 0  ;;  %s3348_s0 = inlined_call_operand.hbm [shape: f32[2,32,256], index: 0, kind: input, shape index: {}]   ;;  %s3349_s1 = inlined_call_operand.hbm [shape: f32[2,32,256], index: 1, kind: input, shape index: {}]   ;;  %s3350_s2 = inlined_call_operand.vmem [shape: f32[40,32], index: 2, kind: input, shape index: {}]   ;;  %s3351_s3 = inlined_call_operand.hbm [shape: f32[2,32,256], index: 3, kind: output, shape index: {}]  }
   0x1   :  { %10 = vsyncpa [#allocation3 + $0x1], 0 }
   0x2   :  { %11 = vsyncpa [#allocation6], 0 }
   0x3   :  { %13 = vsyncpa [#allocation6 + $0x1], 0 }
   0x4   :  { %14 = vsyncpa [#allocation4], 0 }
   0x5   :  { %16 = vsyncpa [#allocation4 + $0x1], 0  ;;  %s2878_s12 = smov 0   ;;  %s2880_s13 = smov 0  }
   0x6   :  { %s2882_s14 = smov 0   ;;  %s2884_s15 = smov 0  }
   0x7 LB: > { %s2899_s16 = sadd.s32 4294967295, %s2846_s15   ;;  %s2426_s17 = sadd.s32 4294967294, %s2846_s15   ;;  %s2846_s15 = sphi %s2884_s15, %s3367_s15   ;;  %s2842_s14 = sphi %s2882_s14, %s3366_s14   ;;  %s2838_s13 = sphi %s2880_s13, %s3365_s13   ;;  %s2834_s12 = sphi %s2878_s12, %s3364_s12  }
   0x8   : > { %s2903_s18 = sadd.s32 1, %s2846_s15   ;;  %s29_s19 = sadd.s32 1, %s2842_s14 }
   0x9   : > { %s26_s20 = ssub.s32 %s2846_s15, %s2903_s18  ;;  %p36_p0 = scmp.ne.s32.totalorder %s2842_s14, %s2838_s13 }
   0xa   : > { %p27_p1 = scmp.eq.s32.totalorder %s26_s20, 0  ;;  %p37_p2 = scmp.eq.s32.totalorder %s2846_s15, 0 }
   0xb   : > { %p42_p3 = scmp.ne.s32.totalorder %s2838_s13, %s2834_s12  ;;  %p43_p4 = scmp.eq.s32.totalorder %s2899_s16, 0 }
   0xc   : > { %s2915_s21 = scalar_select %p27_p1, %s2842_s14, %s29_s19  }
   0xd   : > { %p2917_p5 = por %p37_p2, %p36_p0  ;;  %p2921_p6 = por %p43_p4, %p42_p3 }
   0xe   : > { %p113_p7 = scmp.eq.s32.totalorder %s2899_s16, 1  ;;  %p119_p8 = scmp.eq.s32.totalorder %s2426_s17, 1 }
   0xf   : > { %s3355_s23 = scalar_select %p2921_p6, 1, 0 }
  0x10   : > { %p2658_p10 = scmp.lt.s32.totalorder %s2846_s15, 2  ;;  %p2928_p11 = por %p113_p7, %p36_p0 }
  0x11   : > { %p2932_p12 = por %p119_p8, %p42_p3  ;;  %s2937_s26 = sand.u32 1, %s2842_s14  }
  0x12   : > { %s3356_s24 = scalar_select %p2928_p11, 1, 0 }
  0x13   : > { %s3357_s25 = scalar_select %p2932_p12, 1, 0 }
  0x14   : > { %s2448_s27 = sshll.u32 %s2846_s15, 10  ;;  %s2429_s28 = sshll.u32 %s2937_s26, 6 }
  0x15   : > { %s2946_s4 = scalar_lea.hbm %s3348_s0, %s2448_s27  ;;  %s146_s5 = scalar_lea.vmem [#allocation2], %s2429_s28 }
  0x16   : > { %s153_s6 = sshll.u32 %s146_s5, 4  ;;  %p2952_p13 = pnand %p2658_p10, %p2917_p5  ;;  %s2956_s6 = int_to_ptr.vmem [resolvable:$true] %s153_s6 }
  0x17   : > { %s143_s8 = scalar_lea.sflag [#allocation3], %s2937_s26  ;;  %s2716_s9 = scalar_lea.hbm %s2946_s4, 1024 }
  0x18   : > { %p2717_p0 = scmp.ne.s32.totalorder %s2946_s4, %s2716_s9  ;;  %p2718_p1 = pneg %p2952_p13 }
  0x19   : > { %s2721_s17 = scalar_lea.hbm %s3348_s0, 2048  ;;  %p2722_p4 = scmp.lt.u32.totalorder %s2946_s4, %s3348_s0 }
  0x1a   : > { %p2719_p2 = pnand %p2718_p1, %p2717_p0  ;;  %p2723_p5 = scmp.lt.u32.totalorder %s2721_s17, %s2716_s9 }
  0x1b   : > { %p2725_p8 = scmp.lt.u32.totalorder %s2716_s9, %s2946_s4 }
  0x1c   : > { %p2720_p3 = pneg %p2719_p2  ;;  %p2724_p7 = por %p2723_p5, %p2722_p4 }
  0x1e   : > { %p2726_p10 = por %p2725_p8, %p2724_p7 }
  0x20   : > { %p2727_p9 = pnand %p2726_p10, %p2720_p3 }
  0x22   : > { %2730 = shalt.err (!%p2727_p9)
}
  0x23   : > { %s2731_s22 = scalar_lea.vmem %s2956_s6, 1024  ;;  %s2848_s29 = smov [#allocation2]  }
  0x24   : > { %p2732_p0 = scmp.ne.s32.totalorder %s2956_s6, %s2731_s22  ;;  %s2736_s30 = sshll.u32 %s2848_s29, 4  ;;  %s2737_s30 = int_to_ptr.vmem [resolvable:$false] %s2736_s30 }
  0x25   : > { %s2738_s5 = scalar_lea.vmem %s2737_s30, 2048  ;;  %p2739_p11 = scmp.lt.s32.totalorder %s2956_s6, %s2737_s30 }
  0x26   : > { %p2734_p2 = pnand %p2732_p0, %p2718_p1  ;;  %p2740_p4 = scmp.lt.s32.totalorder %s2738_s5, %s2731_s22 }
  0x28   : > { %p2735_p12 = pneg %p2734_p2  ;;  %p2741_p5 = por %p2740_p4, %p2739_p11 }
  0x2a   : > { %p2742_p7 = pnand %p2741_p5, %p2735_p12 }
  0x2c   : > { %2745 = shalt.err (!%p2742_p7)
}
  0x2d   : > { %s2849_s9 = smov 256   ;;  %s2850_s10 = smov 16  }
  0x2e   : > { %2650 = dma.hbm_to_vmem [thread:$0]  (!%p2952_p13), %s2946_s4, 1024, %s2956_s6, %s143_s8, %s2849_s9, %s2849_s9, %s2850_s10  }
  0x2f   : > { %p2435_p9 = scmp.ge.s32.totalorder %s2846_s15, 1  ;;  %p182_p11 = scmp.lt.s32.totalorder %s2846_s15, 3 }
  0x30   : > { %s3000_s20 = scalar_lea.hbm %s3349_s1, %s2448_s27  ;;  %s167_s22 = scalar_lea.vmem [#allocation5], %s2429_s28 }
  0x31   : > { %p2991_p12 = pnand %p2435_p9, %p182_p11  ;;  %s174_s29 = sshll.u32 %s167_s22, 4  ;;  %s3004_s29 = int_to_ptr.vmem [resolvable:$true] %s174_s29 }
  0x32   : > { %s164_s4 = scalar_lea.sflag [#allocation6], %s2937_s26  ;;  %s2746_s6 = scalar_lea.hbm %s3000_s20, 1024 }
  0x33   : > { %p2747_p3 = scmp.ne.s32.totalorder %s3000_s20, %s2746_s6  ;;  %s2751_s27 = scalar_lea.hbm %s3349_s1, 2048 }
  0x34   : > { %p2752_p0 = scmp.lt.u32.totalorder %s3000_s20, %s3349_s1  ;;  %p2753_p2 = scmp.lt.u32.totalorder %s2751_s27, %s2746_s6 }
  0x35   : > { %p2749_p8 = pnand %p2747_p3, %p2718_p1  ;;  %p2755_p5 = scmp.lt.u32.totalorder %s2746_s6, %s3000_s20 }
  0x36   : > { %p2754_p4 = por %p2753_p2, %p2752_p0 }
  0x37   : > { %p2750_p10 = pneg %p2749_p8 }
  0x38   : > { %p2756_p7 = por %p2755_p5, %p2754_p4 }
  0x3a   : > { %p2757_p9 = pnand %p2756_p7, %p2750_p10 }
  0x3c   : > { %2760 = shalt.err (!%p2757_p9)
}
  0x3d   : > { %s2761_s28 = scalar_lea.vmem %s3004_s29, 1024  ;;  %s2851_s19 = smov [#allocation5]  }
  0x3e   : > { %p2762_p11 = scmp.ne.s32.totalorder %s3004_s29, %s2761_s28  ;;  %s2766_s22 = sshll.u32 %s2851_s19, 4  ;;  %s2767_s22 = int_to_ptr.vmem [resolvable:$false] %s2766_s22 }
  0x3f   : > { %s2768_s8 = scalar_lea.vmem %s2767_s22, 2048  ;;  %p2769_p6 = scmp.lt.s32.totalorder %s3004_s29, %s2767_s22 }
  0x40   : > { %p2764_p3 = pnand %p2762_p11, %p2718_p1  ;;  %p2770_p0 = scmp.lt.s32.totalorder %s2768_s8, %s2761_s28 }
  0x42   : > { %p2765_p8 = pneg %p2764_p3  ;;  %p2771_p2 = por %p2770_p0, %p2769_p6 }
  0x44   : > { %p2772_p4 = pnand %p2771_p2, %p2765_p8 }
  0x46   : > { %2775 = shalt.err (!%p2772_p4)
}
  0x47   : > { %2653 = dma.hbm_to_vmem [thread:$0]  (!%p2952_p13), %s3000_s20, 1024, %s3004_s29, %s164_s4, %s2849_s9, %s2849_s9, %s2850_s10  }
  0x48   : > { %186 = sbr.rel (%p2991_p12) target bundleno = 994 (0x3e2), region = 32  ;;  %s3038_s6 = sand.u32 (!%p2991_p12), 1, %s2838_s13  }
  0x49   : > { %s3041_s30 = sshll.u32 (!%p2991_p12), %s3038_s6, 6  ;;  %s189_s7 = scalar_lea.sflag (!%p2991_p12), [#allocation3], %s3038_s6 }
  0x4a   : > { %s192_s27 = scalar_lea.vmem (!%p2991_p12), [#allocation2], %s3041_s30  ;;  %p3360_p6 = scmp.ne.s32.totalorder (!%p2991_p12), %s3355_s23, 0 }
  0x4f   : > { %2821 = dma.done.wait (%p3360_p6), %s189_s7, 1024  }
  0x50   : > { %2823 = vsyncadd (%p3360_p6), %s189_s7, 4294966272  ;;  %s198_s26 = scalar_lea.sflag [#allocation6], %s3038_s6  ;;  %s201_s9 = scalar_lea.vmem [#allocation5], %s3041_s30 }
  0x51   : > { %2825 = dma.done.wait (%p3360_p6), %s198_s26, 1024  }
  0x52   : > { %2827 = vsyncadd (%p3360_p6), %s198_s26, 4294966272  ;;  %v3055_v0 = vld [vmem:[%s192_s27] sm:$0xff]  ;;  %v3057_v1 = vld [vmem:[%s192_s27 + $0x8] sm:$0xff]  ;;  %vm313_vm0 = vcmask 261120   ;;  %v2852_v31 = vmov 0.0   ;;  %vm2853_vm1 = vmmov 0   ;;  %v286_v32 = vlaneseq }
  0x53   : > { %v245_v2 = vadd.f32 %v3057_v1, %v3055_v0  ;;  %v3061_v3 = vld [vmem:[%s192_s27 + $0x20] sm:$0xff]  ;;  %v3063_v4 = vld [vmem:[%s192_s27 + $0x28] sm:$0xff]  ;;  %v3067_v6 = vld [vmem:[%s192_s27 + $0x10] sm:$0xff]  ;;  %2504 = vmatprep.subr.mxu1 %v2852_v31  ;;  %2499 = vmatprep.subr.mxu0 %v2852_v31  ;;  %vm297_vm2 = vcmask 130112   ;;  %vm304_vm3 = vcmask 195712   ;;  %vm311_vm4 = vcmask 261312  }
  0x54   : > { %v251_v5 = vadd.f32 %v3063_v4, %v3061_v3  ;;  %v3069_v7 = vld [vmem:[%s192_s27 + $0x18] sm:$0xff]  ;;  %v3071_v8 = vld [vmem:[%s192_s27 + $0x30] sm:$0xff]  ;;  %v3075_v10 = vld [vmem:[%s201_s9] sm:$0xff]  ;;  %2506 = vmatprep.mubr.msk.f32.mxu1 %vm2853_vm1, %v2852_v31  ;;  %2501 = vmatprep.mubr.msk.f32.mxu0 %vm2853_vm1, %v2852_v31  ;;  %v287_v33 = vand.u32 127, %v286_v32  ;;  %v3128_v35 = vshrl.u32 %v286_v32, 7  ;;  %vm1244_vm5 = vcmask 64512  }
  0x55   : > { %246 = vadd.xlane.f32.xlu0 %v245_v2  ;;  %v3073_v9 = vld [vmem:[%s192_s27 + $0x38] sm:$0xff]  ;;  %v3077_v11 = vld [vmem:[%s201_s9 + $0x8] sm:$0xff]  ;;  %v248_v12 = vadd.f32 %v3069_v7, %v3067_v6  ;;  %v3083_v14 = vld [vmem:[%s201_s9 + $0x10] sm:$0xff]  ;;  %s2450_s22 = sshll.u32 %s2899_s16, 10  ;;  %s228_s8 = scalar_lea.vmem [#allocation7], %s3041_s30 }
  0x56   : > { %252 = vadd.xlane.f32.xlu1 %v251_v5  ;;  %v254_v13 = vadd.f32 %v3073_v9, %v3071_v8  ;;  %v3085_v15 = vld [vmem:[%s201_s9 + $0x18] sm:$0xff]  ;;  %v261_v16 = vadd.f32 %v3077_v11, %v3075_v10  ;;  %v3089_v17 = vld [vmem:[%s201_s9 + $0x20] sm:$0xff]  ;;  %v3091_v18 = vld [vmem:[%s201_s9 + $0x28] sm:$0xff]  ;;  %v292_v36 = vadd.s32 4294967288, %v287_v33  ;;  %v299_v38 = vadd.s32 4294967280, %v287_v33  ;;  %s2330_s7 = sshll.u32 %s228_s8, 4  ;;  %s3302_s27 = scalar_lea.hbm %s3351_s3, %s2450_s22  ;;  %s3304_s7 = int_to_ptr.vmem [resolvable:$true] %s2330_s7 }
  0x57   : > { %v264_v19 = vadd.f32 %v3085_v15, %v3083_v14  ;;  %v3095_v20 = vld [vmem:[%s201_s9 + $0x30] sm:$0xff]  ;;  %v3097_v21 = vld [vmem:[%s201_s9 + $0x38] sm:$0xff]  ;;  %v267_v22 = vadd.f32 %v3091_v18, %v3089_v17  ;;  %v278_v24 = vld [vmem:[%s3350_s2 + $0x8] sm:$0xff]  ;;  %v306_v39 = vadd.s32 4294967272, %v287_v33  ;;  %v290_v42 = vsub.s32 %v287_v33, %v3128_v35  ;;  %s2317_s26 = scalar_lea.sflag [#allocation4], %s3038_s6  ;;  %s2776_s9 = scalar_lea.vmem %s3304_s7, 1024 }
  0x58   : > { %v270_v23 = vadd.f32 %v3097_v21, %v3095_v20  ;;  %v317_v25 = vsel %vm313_vm0, %v278_v24, 0  ;;  %v277_v34 = vld [vmem:[%s3350_s2] sm:$0xff]  ;;  %v295_v44 = vsub.s32 %v292_v36, %v3128_v35  ;;  %v302_v45 = vsub.s32 %v299_v38, %v3128_v35  ;;  %p2777_p13 = scmp.ne.s32.totalorder %s3304_s7, %s2776_s9  ;;  %p3361_p1 = scmp.ne.s32.totalorder %s3356_s24, 0 }
  0x59   : > { %249 = vadd.xlane.f32.xlu0 %v248_v12  ;;  %v3107_v26 = vand.u32 4294901760, %v317_v25  ;;  %v791_v41 = vsel %vm313_vm0, %v277_v34, 0  ;;  %v309_v48 = vsub.s32 %v306_v39, %v3128_v35  ;;  %s2855_s23 = smov [#allocation7]  }
  0x5a   : > { %255 = vadd.xlane.f32.xlu1 %v254_v13  ;;  %v3135_v49 = vand.u32 4294901760, %v791_v41  ;;  %p2778_p12 = pnand %p2777_p13, %p3361_p1  ;;  %s2780_s10 = sshll.u32 %s2855_s23, 4  ;;  %s2781_s10 = int_to_ptr.vmem [resolvable:$false] %s2780_s10 }
  0x5b   : > { %v3110_v27 = vsub.f32 %v317_v25, %v3107_v26  ;;  %2500 = vmatpush3.xpose.msra.mxu0 %v3107_v26  ;;  %s2782_s11 = scalar_lea.vmem %s2781_s10, 2048  ;;  %p2783_p5 = scmp.lt.s32.totalorder %s3304_s7, %s2781_s10 }
  0x5c   : > { %2509 = vmatprep.subr.mxu0 %v2852_v31  ;;  %v3138_v58 = vsub.f32 %v791_v41, %v3135_v49  ;;  %p2779_p10 = pneg %p2778_p12  ;;  %p2784_p7 = scmp.lt.s32.totalorder %s2782_s11, %s2776_s9 }
  0x5d   : > { %262 = vadd.xlane.f32.xlu0 %v261_v16  ;;  %v398_v28 = vand.u32 4294901760, %v3110_v27 }
  0x5e   : > { %265 = vadd.xlane.f32.xlu1 %v264_v19  ;;  %v872_v19 = vand.u32 4294901760, %v3138_v58  ;;  %p2785_p9 = por %p2784_p7, %p2783_p5 }
  0x5f   : > { %v399_v29 = vsub.f32 %v3110_v27, %v398_v28 }
  0x60   : > { %v873_v34 = vsub.f32 %v3138_v58, %v872_v19  ;;  %p2786_p11 = pnand %p2785_p9, %p2779_p10 }
  0x61   : > { %268 = vadd.xlane.f32.xlu0 %v267_v22  ;;  %v400_v30 = vand.u32 4294901760, %v399_v29 }
  0x62   : > { %271 = vadd.xlane.f32.xlu1 %v270_v23  ;;  %v874_v41 = vand.u32 4294901760, %v873_v34 }
  0x63   : > { %2505 = vmatpush3.xpose.msra.mxu1 %v400_v30 }
  0x64   : > { %2514 = vmatprep.subr.mxu1 %v2852_v31 }
  0xe2   : > { %v247_v37 = vpop.xlane.xlu0 %246 }
  0xe3   : > { %v253_v40 = vpop.xlane.xlu1 %252  ;;  %v257_v43 = vmul.f32 0.00390625, %v247_v37 }
  0xe4   : > { %v259_v46 = vmul.f32 0.00390625, %v253_v40 }
  0xe5   : > { %v291_v53 = vrot.slane %v257_v43, %v290_v42 }
  0xe6   : > { %v250_v47 = vpop.xlane.xlu0 %249  ;;  %v303_v55 = vrot.slane %v259_v46, %v302_v45  ;;  %v279_v46 = vld [vmem:[%s3350_s2 + $0x10] sm:$0xff] }
  0xe7   : > { %v258_v50 = vmul.f32 0.00390625, %v250_v47  ;;  %v256_v51 = vpop.xlane.xlu1 %255 }
  0xe8   : > { %v260_v52 = vmul.f32 0.00390625, %v256_v51 }
  0xe9   : > { %v296_v54 = vrot.slane %v258_v50, %v295_v44 }
  0xea   : > { %v310_v56 = vrot.slane %v260_v52, %v309_v48  ;;  %v263_v57 = vpop.xlane.xlu0 %262 }
  0xeb   : > { %v298_v59 = vsel %vm297_vm2, %v296_v54, %v291_v53  ;;  %v273_v60 = vmul.f32 0.00390625, %v263_v57  ;;  %v266_v61 = vpop.xlane.xlu1 %265 }
  0xec   : > { %v305_v62 = vsel %vm304_vm3, %v303_v55, %v298_v59  ;;  %v274_v63 = vmul.f32 0.00390625, %v266_v61 }
  0xed   : > { %v312_v2 = vsel %vm311_vm4, %v310_v56, %v305_v62  ;;  %v772_v5 = vrot.slane %v273_v60, %v290_v42 }
  0xee   : > { %v314_v12 = vsel %vm313_vm0, %v312_v2, 0  ;;  %v776_v13 = vrot.slane %v274_v63, %v295_v44  ;;  %v269_v16 = vpop.xlane.xlu0 %268 }
  0xef   : > { %v275_v22 = vmul.f32 0.00390625, %v269_v16  ;;  %v272_v23 = vpop.xlane.xlu1 %271  ;;  %v385_v24 = vand.u32 4294901760, %v314_v12 }
  0xf0   : > { %v777_v25 = vsel %vm297_vm2, %v776_v13, %v772_v5  ;;  %v276_v29 = vmul.f32 0.00390625, %v272_v23 }
  0xf1   : > { %v781_v30 = vrot.slane %v275_v22, %v302_v45  ;;  %2507 = vmatmul.mubr.f32.vlgmr.msra.gmra.mrb[0].mxu1 %v385_v24  ;;  %v386_v32 = vsub.f32 %v314_v12, %v385_v24 }
  0xf2   : > { %v786_v33 = vrot.slane %v276_v29, %v309_v48  ;;  %2515 = vmatpush3.xpose.msra.mxu1 %v3107_v26  ;;  %2516 = vmatprep.mubr.msk.f32.mxu1 %vm2853_vm1, %v2852_v31  ;;  %v3201_v48 = vand.u32 4294901760, %v279_v46 }
  0xf3   : > { %v782_v36 = vsel %vm304_vm3, %v781_v30, %v777_v25  ;;  %v387_v37 = vand.u32 4294901760, %v386_v32  ;;  %2524 = vmatprep.subr.mxu1 %v2852_v31 }
  0xf4   : > { %v787_v38 = vsel %vm311_vm4, %v786_v33, %v782_v36 }
  0xf5   : > { %v788_v39 = vsel %vm313_vm0, %v787_v38, 0  ;;  %2517 = vmatmul.mubr.f32.vlgmr.msra.gmra.mrb[2].mxu1 %v387_v37  ;;  %v388_v40 = vsub.f32 %v386_v32, %v387_v37 }
  0xf6   : > { %2525 = vmatpush3.xpose.msra.mxu1 %v3107_v26  ;;  %2526 = vmatprep.mubr.msk.f32.mxu1 %vm2853_vm1, %v2852_v31  ;;  %v859_v42 = vand.u32 4294901760, %v788_v39 }
  0xf7   : > { %v389_v43 = vand.u32 4294901760, %v388_v40  ;;  %2534 = vmatprep.subr.mxu1 %v2852_v31  ;;  %v3210_v40 = vld [vmem:[%s3350_s2 + $0x20] sm:$0xff] }
  0xf8   : > { %v860_v44 = vsub.f32 %v788_v39, %v859_v42 }
  0xf9   : > { %2502 = vmatmul.mubr.f32.vlgmr.msra.gmra.mrb[0].mxu0 %v389_v43  ;;  %2527 = vmatmul.mubr.f32.vlgmr.msra.gmra.mrb[4].mxu1 %v385_v24 }
  0xfa   : > { %2510 = vmatpush3.xpose.msra.mxu0 %v3110_v27  ;;  %2535 = vmatpush3.xpose.msra.mxu1 %v874_v41  ;;  %v861_v26 = vand.u32 4294901760, %v860_v44 }
  0xfb   : > { %2511 = vmatprep.mubr.msk.f32.mxu0 %vm2853_vm1, %v2852_v31  ;;  %2519 = vmatprep.subr.mxu0 %v2852_v31 }
  0xfc   : > { %2536 = vmatprep.mubr.msk.f32.mxu1 %vm2853_vm1, %v2852_v31  ;;  %2544 = vmatprep.subr.mxu1 %v2852_v31  ;;  %v862_v45 = vsub.f32 %v860_v44, %v861_v26 }
  0xfd   : > { %2512 = vmatmul.mubr.f32.vlgmr.msra.gmra.mrb[2].mxu0 %v386_v32  ;;  %2537 = vmatmul.mubr.f32.vlgmr.msra.gmra.mrb[6].mxu1 %v859_v42 }
  0xfe   : > { %2520 = vmatpush3.xpose.msra.mxu0 %v398_v28  ;;  %2545 = vmatpush3.xpose.msra.mxu1 %v3135_v49  ;;  %v863_v27 = vand.u32 4294901760, %v862_v45  ;;  %v280_v28 = vld [vmem:[%s3350_s2 + $0x18] sm:$0xff] }
  0xff   : > { %2521 = vmatprep.mubr.msk.f32.mxu0 %vm2853_vm1, %v2852_v31  ;;  %2529 = vmatprep.subr.mxu0 %v2852_v31  ;;  %v3199_v47 = vand.u32 4294901760, %v280_v28 }
 0x100   : > { %2546 = vmatprep.mubr.msk.f32.mxu1 %vm2853_vm1, %v2852_v31  ;;  %2554 = vmatprep.subr.mxu1 %v2852_v31 }
 0x101   : > { %2522 = vmatmul.mubr.f32.vlgmr.msra.gmra.mrb[4].mxu0 %v385_v24  ;;  %2547 = vmatmul.mubr.f32.vlgmr.msra.gmra.mrb[8].mxu1 %v861_v26  ;;  %v1780_v43 = vsub.f32 %v280_v28, %v3199_v47  ;;  %v2854_v28 = vmov 0  }
 0x102   : > { %2530 = vmatpush3.xpose.msra.mxu0 %v3135_v49  ;;  %2555 = vmatpush3.xpose.msra.mxu1 %v3135_v49 }
 0x103   : > { %2531 = vmatprep.mubr.msk.f32.mxu0 %vm2853_vm1, %v2852_v31  ;;  %2539 = vmatprep.subr.mxu0 %v2852_v31 }
 0x104   : > { %2556 = vmatprep.mubr.msk.f32.mxu1 %vm2853_vm1, %v2852_v31  ;;  %2589 = vmatprep.subr.mxu1 %v2852_v31 }
 0x105   : > { %2532 = vmatmul.mubr.f32.vlgmr.msra.gmra.mrb[6].mxu0 %v863_v27  ;;  %2557 = vmatmul.mubr.f32.vlgmr.msra.gmra.mrb[10].mxu1 %v859_v42  ;;  %v1781_v27 = vand.u32 4294901760, %v1780_v43 }
 0x106   : > { %2540 = vmatpush3.xpose.msra.mxu0 %v3138_v58  ;;  %2541 = vmatprep.mubr.msk.f32.mxu0 %vm2853_vm1, %v2852_v31 }
 0x107   : > { %2549 = vmatprep.subr.mxu0 %v2852_v31  ;;  %2591 = vmatprep.mubr.msk.f32.mxu1 %vm2853_vm1, %v2852_v31 }
 0x108   : > { %2590 = vmatpush3.msra.mxu1 %v3199_v47  ;;  %2699 = vset.pattern.permute.xlu0 %v2854_v28 }
 0x109   : > { %2542 = vmatmul.mubr.f32.vlgmr.msra.gmra.mrb[8].mxu0 %v860_v44  ;;  %2594 = vmatprep.subr.mxu1 %v2852_v31  ;;  %v1326_v44 = vsub.f32 %v279_v46, %v3201_v48  ;;  %v1242_v46 = vrot.slane %v3210_v40, 1 }
 0x10a   : > { %2550 = vmatpush3.xpose.msra.mxu0 %v872_v19  ;;  %2551 = vmatprep.mubr.msk.f32.mxu0 %vm2853_vm1, %v2852_v31 }
 0x10b   : > { %2559 = vmatprep.subr.mxu0 %v2852_v31 }
 0x10d   : > { %2552 = vmatmul.mubr.f32.vlgmr.msra.gmra.mrb[10].mxu0 %v859_v42 }
 0x10e   : > { %2561 = vmatprep.mubr.msk.f32.mxu0 %vm2853_vm1, %v2852_v31  ;;  %2560 = vmatpush3.msra.mxu0 %v3201_v48 }
 0x10f   : > { %2564 = vmatprep.subr.mxu0 %v2852_v31 }
 0x1c4   : > { %v467_v49 = vpop.f32.mrb[0].mxu1 }
 0x1c5   : > { %v2508_v50 = vpop.f32.mrb[1].mxu1 }
 0x1c8   : > { %v615_v51 = vpop.f32.mrb[2].mxu1 }
 0x1c9   : > { %v2518_v52 = vpop.f32.mrb[3].mxu1 }
 0x1ca   : > { %v1782_v52 = vsub.f32 %v1780_v43, %v1781_v27 }
 0x1cc   : > { %v391_v53 = vpop.f32.mrb[0].mxu0  ;;  %v761_v54 = vpop.f32.mrb[4].mxu1 }
 0x1cd   : > { %v468_v55 = vadd.f32 %v467_v49, %v391_v53  ;;  %v2503_v56 = vpop.f32.mrb[1].mxu0  ;;  %v2528_v57 = vpop.f32.mrb[5].mxu1  ;;  %v1327_v49 = vand.u32 4294901760, %v1326_v44 }
 0x1ce   : > { %v1783_v56 = vand.u32 4294901760, %v1782_v52 }
 0x1cf   : > { %v1328_v53 = vsub.f32 %v1326_v44, %v1327_v49 }
 0x1d0   : > { %v541_v58 = vpop.f32.mrb[2].mxu0  ;;  %v941_v59 = vpop.f32.mrb[6].mxu1 }
 0x1d1   : > { %v542_v60 = vadd.f32 %v541_v58, %v468_v55  ;;  %v2513_v61 = vpop.f32.mrb[3].mxu0  ;;  %v2538_v62 = vpop.f32.mrb[7].mxu1  ;;  %v1329_v57 = vand.u32 4294901760, %v1328_v53 }
 0x1d3   : > { %v616_v63 = vadd.f32 %v615_v51, %v542_v60 }
 0x1d4   : > { %v689_v2 = vpop.f32.mrb[4].mxu0  ;;  %v1089_v5 = vpop.f32.mrb[8].mxu1 }
 0x1d5   : > { %v690_v12 = vadd.f32 %v689_v2, %v616_v63  ;;  %v2523_v13 = vpop.f32.mrb[5].mxu0  ;;  %v2548_v16 = vpop.f32.mrb[9].mxu1 }
 0x1d7   : > { %v762_v19 = vadd.f32 %v761_v54, %v690_v12 }
 0x1d8   : > { %v865_v22 = vpop.f32.mrb[6].mxu0  ;;  %v1235_v23 = vpop.f32.mrb[10].mxu1 }
 0x1d9   : > { %v866_v24 = vadd.f32 %v865_v22, %v762_v19  ;;  %v2533_v25 = vpop.f32.mrb[7].mxu0  ;;  %v2558_v29 = vpop.f32.mrb[11].mxu1 }
 0x1db   : > { %v942_v30 = vadd.f32 %v941_v59, %v866_v24  ;;  %v1700_v59 = vrot.slane %v3210_v40, 2 }
 0x1dc   : > { %v1015_v32 = vpop.f32.mrb[8].mxu0 }
 0x1dd   : > { %v1016_v33 = vadd.f32 %v1015_v32, %v942_v30  ;;  %v2543_v34 = vpop.f32.mrb[9].mxu0 }
 0x1df   : > { %v1090_v36 = vadd.f32 %v1089_v5, %v1016_v33  ;;  %v2172_v33 = vsub.s32 3, %v3128_v35 }
 0x1e0   : > { %v1163_v37 = vpop.f32.mrb[10].mxu0 }
 0x1e1   : > { %v1164_v38 = vadd.f32 %v1163_v37, %v1090_v36  ;;  %v2553_v39 = vpop.f32.mrb[11].mxu0 }
 0x1e3   : > { %v1236_v41 = vadd.f32 %v1235_v23, %v1164_v38  ;;  %v2199_v38 = vsub.s32 4, %v3128_v35 }
 0x1e5   : > { %v1239_v42 = vadd.f32 %v1236_v41, %v3210_v40 }
 0x1e7   : > { %v1240_v26 = vmax.f32 %v1239_v42, 0.0 }
 0x1e9   : > { %v1246_v45 = vsel %vm1244_vm5, %v1240_v26, 0 }
 0x1ea   : > { %v1314_v50 = vand.u32 4294901760, %v1246_v45 }
 0x1ec   : > { %v1315_v51 = vsub.f32 %v1246_v45, %v1314_v50 }
 0x1ee   : > { %v1316_v54 = vand.u32 4294901760, %v1315_v51 }
 0x1f0   : > { %v1317_v55 = vsub.f32 %v1315_v51, %v1316_v54 }
 0x1f2   : > { %v1318_v58 = vand.u32 4294901760, %v1317_v55 }
 0x1f4   : > { %2562 = vmatmul.mubr.f32.vlgmr.msra.gmra.mrb[12].mxu0 %v1318_v58  ;;  %2592 = vmatmul.mubr.f32.vlgmr.msra.gmra.mrb[12].mxu1 %v1318_v58 }
 0x1f5   : > { %2595 = vmatpush3.msra.mxu1 %v1783_v56  ;;  %2565 = vmatpush3.msra.mxu0 %v1329_v57 }
 0x1f6   : > { %2566 = vmatprep.mubr.msk.f32.mxu0 %vm2853_vm1, %v2852_v31  ;;  %2596 = vmatprep.mubr.msk.f32.mxu1 %vm2853_vm1, %v2852_v31 }
 0x1f7   : > { %2599 = vmatprep.subr.mxu1 %v2852_v31  ;;  %2569 = vmatprep.subr.mxu0 %v2852_v31 }
 0x1fc   : > { %2567 = vmatmul.mubr.f32.vlgmr.msra.gmra.mrb[12].mxu0 %v1314_v50  ;;  %2597 = vmatmul.mubr.f32.vlgmr.msra.gmra.mrb[12].mxu1 %v1314_v50 }
 0x1fd   : > { %2600 = vmatpush3.msra.mxu1 %v1780_v43  ;;  %2570 = vmatpush3.msra.mxu0 %v1326_v44 }
 0x1fe   : > { %2571 = vmatprep.mubr.msk.f32.mxu0 %vm2853_vm1, %v2852_v31  ;;  %2601 = vmatprep.mubr.msk.f32.mxu1 %vm2853_vm1, %v2852_v31 }
 0x1ff   : > { %2604 = vmatprep.subr.mxu1 %v2852_v31  ;;  %2574 = vmatprep.subr.mxu0 %v2852_v31 }
 0x204   : > { %2572 = vmatmul.mubr.f32.vlgmr.msra.gmra.mrb[12].mxu0 %v1315_v51  ;;  %2602 = vmatmul.mubr.f32.vlgmr.msra.gmra.mrb[12].mxu1 %v1315_v51 }
 0x205   : > { %2605 = vmatpush3.msra.mxu1 %v3199_v47  ;;  %2575 = vmatpush3.msra.mxu0 %v3201_v48 }
 0x206   : > { %2576 = vmatprep.mubr.msk.f32.mxu0 %vm2853_vm1, %v2852_v31  ;;  %2606 = vmatprep.mubr.msk.f32.mxu1 %vm2853_vm1, %v2852_v31 }
 0x207   : > { %2609 = vmatprep.subr.mxu1 %v2852_v31  ;;  %2579 = vmatprep.subr.mxu0 %v2852_v31 }
 0x20c   : > { %2577 = vmatmul.mubr.f32.vlgmr.msra.gmra.mrb[12].mxu0 %v1316_v54  ;;  %2607 = vmatmul.mubr.f32.vlgmr.msra.gmra.mrb[12].mxu1 %v1316_v54 }
 0x20d   : > { %2610 = vmatpush3.msra.mxu1 %v1781_v27  ;;  %2580 = vmatpush3.msra.mxu0 %v1327_v49 }
 0x20e   : > { %2581 = vmatprep.mubr.msk.f32.mxu0 %vm2853_vm1, %v2852_v31  ;;  %2611 = vmatprep.mubr.msk.f32.mxu1 %vm2853_vm1, %v2852_v31 }
 0x20f   : > { %2614 = vmatprep.subr.mxu1 %v2852_v31  ;;  %2584 = vmatprep.subr.mxu0 %v2852_v31 }
 0x214   : > { %2582 = vmatmul.mubr.f32.vlgmr.msra.gmra.mrb[12].mxu0 %v1314_v50  ;;  %2612 = vmatmul.mubr.f32.vlgmr.msra.gmra.mrb[12].mxu1 %v1314_v50 }
 0x215   : > { %2615 = vmatpush3.msra.mxu1 %v3199_v47  ;;  %2585 = vmatpush3.msra.mxu0 %v3201_v48 }
 0x216   : > { %2586 = vmatprep.mubr.msk.f32.mxu0 %vm2853_vm1, %v2852_v31  ;;  %2616 = vmatprep.mubr.msk.f32.mxu1 %vm2853_vm1, %v2852_v31 }
 0x21c   : > { %2587 = vmatmul.mubr.f32.vlgmr.msra.gmra.mrb[12].mxu0 %v1314_v50  ;;  %2617 = vmatmul.mubr.f32.vlgmr.msra.gmra.mrb[12].mxu1 %v1314_v50 }
 0x2ef   : > { %v1690_v60 = vpop.f32.mrb[12].mxu0  ;;  %v2144_v61 = vpop.f32.mrb[12].mxu1 }
 0x2f0   : > { %v2619_v62 = vadd.f32 %v1690_v60, %v1242_v46  ;;  %v2620_v47 = vadd.f32 %v2144_v61, %v1700_v59  ;;  %v2588_v63 = vpop.f32.mrb[13].mxu0  ;;  %v2618_v48 = vpop.f32.mrb[13].mxu1 }
 0x2f2   : > { %v2439_v2 = vmul.f32 -1.442695, %v2619_v62  ;;  %v2440_v5 = vmul.f32 -1.442695, %v2620_v47 }
 0x2f4   : > { %2700 = vpow2.f32 %v2439_v2 }
 0x2f5   : > { %2702 = vpow2.f32 %v2440_v5 }
 0x2fe   : > { %v2701_v12 = vpop.eup %2700 }
 0x2ff   : > { %v2703_v31 = vpop.eup %2702  ;;  %v1697_v13 = vadd.f32 1.0, %v2701_v12 }
 0x300   : > { %v2151_v16 = vadd.f32 1.0, %v2703_v31 }
 0x301   : > { %2704 = vrcp.f32 %v1697_v13 }
 0x302   : > { %2706 = vrcp.f32 %v2151_v16 }
 0x30b   : > { %v2705_v19 = vpop.eup %2704 }
 0x30c   : > { %v2707_v22 = vpop.eup %2706  ;;  %v2163_v23 = vrot.slane %v2705_v19, 5 }
 0x30d   : > { %v2155_v24 = vrot.slane %v2707_v22, 4 }
 0x30e   : > { %v2165_v25 = vmul.f32 %v2163_v23, %v3210_v40 }
 0x30f   : > { %v2157_v29 = vmul.f32 %v2155_v24, %v3210_v40 }
 0x310   : > { %v2167_v30 = vrot.slane %v2165_v25, 7 }
 0x311   : > { %v2159_v32 = vrot.slane %v2157_v29, 1 }
 0x312   : > { %v2169_v37 = vadd.f32 %v2167_v30, %v3210_v40 }
 0x313   : > { %v2161_v34 = vadd.f32 %v2159_v32, %v3210_v40 }
 0x314   : > { %v2200_v39 = vrot.slane %v2169_v37, %v2199_v38 }
 0x315   : > { %v2173_v36 = vrot.slane %v2161_v34, %v2172_v33 }
 0x317   : > { %2179 = vbcast.lane.b32.xlu1 %v2173_v36, 264  ;;  %2175 = vbcast.lane.b32.xlu0 %v2173_v36, 256 }
 0x31b   : > { %2183 = vbcast.lane.b32.xlu0 %v2173_v36, 272  ;;  %2202 = vbcast.lane.b32.xlu1 %v2200_v39, 256 }
 0x31f   : > { %2187 = vbcast.lane.b32.xlu0 %v2173_v36, 280  ;;  %2206 = vbcast.lane.b32.xlu1 %v2200_v39, 264 }
 0x323   : > { %2210 = vbcast.lane.b32.xlu1 %v2200_v39, 272  ;;  %2251 = vperm.xlu0 %2699, %v3210_v40  }
 0x327   : > { %2214 = vbcast.lane.b32.xlu1 %v2200_v39, 280 }
 0x389   : > { %v2180_v41 = vpop.permute.xlu1 %2179  ;;  %v2176_v42 = vpop.permute.xlu0 %2175 }
 0x38a   : > { %v2191_v49 = vmul.f32 %v2180_v41, %v3067_v6  ;;  %v2192_v50 = vmul.f32 %v2180_v41, %v3069_v7  ;;  %v2189_v40 = vmul.f32 %v2176_v42, %v3055_v0  ;;  %v2190_v53 = vmul.f32 %v2176_v42, %v3057_v1 }
 0x38d   : > { %v2203_v43 = vpop.permute.xlu1 %2202  ;;  %v2184_v44 = vpop.permute.xlu0 %2183 }
 0x38e   : > { %v2216_v51 = vmul.f32 %v2203_v43, %v3075_v10  ;;  %v2217_v52 = vmul.f32 %v2203_v43, %v3077_v11  ;;  %v2193_v54 = vmul.f32 %v2184_v44, %v3061_v3  ;;  %v2194_v55 = vmul.f32 %v2184_v44, %v3063_v4 }
 0x390   : > { %v2224_v60 = vadd.f32 %v2216_v51, %v2189_v40  ;;  %v2225_v61 = vadd.f32 %v2217_v52, %v2190_v53  ;;  %v2278_v53 = vsub.s32 5, %v3128_v35  ;;  %v2273_v35 = vsub.f32 %v3063_v4, %v3091_v18 }
 0x391   : > { %v2207_v26 = vpop.permute.xlu1 %2206  ;;  %v2188_v57 = vpop.permute.xlu0 %2187 }
 0x392   : > { %v2218_v45 = vmul.f32 %v2207_v26, %v3083_v14  ;;  %v2219_v27 = vmul.f32 %v2207_v26, %v3085_v15  ;;  %v2195_v63 = vmul.f32 %v2188_v57, %v3071_v8  ;;  %v2196_v48 = vmul.f32 %v2188_v57, %v3073_v9 }
 0x393   : > { %v2274_v57 = vsub.f32 %v3071_v8, %v3095_v20 }
 0x394   : > { %v2226_v58 = vadd.f32 %v2218_v45, %v2191_v49  ;;  %v2227_v28 = vadd.f32 %v2219_v27, %v2192_v50 }
 0x395   : > { %v2211_v56 = vpop.permute.xlu1 %2210 }
 0x396   : > { %v2220_v46 = vmul.f32 %v2211_v56, %v3089_v17  ;;  %v2221_v59 = vmul.f32 %v2211_v56, %v3091_v18  ;;  %v2232_v5 = vadd.f32 %v2226_v58, %v2224_v60  ;;  %v2241_v12 = vadd.f32 %v2227_v28, %v2225_v61 }
 0x397   : > { %v2270_v56 = vsub.f32 %v3067_v6, %v3083_v14  ;;  %v2269_v28 = vsub.f32 %v3057_v1, %v3077_v11 }
 0x398   : > { %v2228_v62 = vadd.f32 %v2220_v46, %v2193_v54  ;;  %v2229_v47 = vadd.f32 %v2221_v59, %v2194_v55  ;;  %v2268_v54 = vsub.f32 %v3055_v0, %v3075_v10  ;;  %v2272_v55 = vsub.f32 %v3061_v3, %v3089_v17 }
 0x399   : > { %v2215_v2 = vpop.permute.xlu1 %2214  ;;  %v2271_v0 = vsub.f32 %v3069_v7, %v3085_v15  ;;  %v2275_v3 = vsub.f32 %v3073_v9, %v3097_v21 }
 0x39a   : > { %v2222_v31 = vmul.f32 %v2215_v2, %v3095_v20  ;;  %v2223_v13 = vmul.f32 %v2215_v2, %v3097_v21  ;;  %v2233_v16 = vadd.f32 %v2232_v5, %v2228_v62  ;;  %v2242_v19 = vadd.f32 %v2241_v12, %v2229_v47 }
 0x39c   : > { %v2230_v22 = vadd.f32 %v2222_v31, %v2195_v63  ;;  %v2231_v23 = vadd.f32 %v2223_v13, %v2196_v48 }
 0x39e   : > { %v2234_v24 = vadd.f32 %v2233_v16, %v2230_v22  ;;  %v2243_v25 = vadd.f32 %v2242_v19, %v2231_v23 }
 0x3a0   : > { %v2235_v29 = vrot.slane %v2234_v24, 4  ;;  %v2244_v30 = vrot.slane %v2243_v25, 4 }
 0x3a2   : > { %v2236_v32 = vadd.f32 %v2235_v29, %v2234_v24  ;;  %v2245_v33 = vadd.f32 %v2244_v30, %v2243_v25  ;;  %v2252_v42 = vpop.permute.xlu0 %2251 }
 0x3a4   : > { %v2237_v34 = vrot.slane %v2236_v32, 2  ;;  %v2246_v36 = vrot.slane %v2245_v33, 2 }
 0x3a6   : > { %v2238_v37 = vadd.f32 %v2237_v34, %v2236_v32  ;;  %v2247_v38 = vadd.f32 %v2246_v36, %v2245_v33 }
 0x3a8   : > { %v2239_v39 = vrot.slane %v2238_v37, 1  ;;  %v2248_v41 = vrot.slane %v2247_v38, 1 }
 0x3aa   : > { %v2240_v43 = vadd.f32 %v2239_v39, %v2238_v37  ;;  %v2249_v44 = vadd.f32 %v2248_v41, %v2247_v38 }
 0x3ac   : > { %v2254_v26 = vadd.f32 %v2252_v42, %v2240_v43  ;;  %v2255_v45 = vadd.f32 %v2252_v42, %v2249_v44 }
 0x3ae   : > { %v2441_v27 = vmul.f32 -1.442695, %v2254_v26  ;;  %v2442_v49 = vmul.f32 -1.442695, %v2255_v45 }
 0x3b0   : > { %2708 = vpow2.f32 %v2441_v27 }
 0x3b1   : > { %2710 = vpow2.f32 %v2442_v49 }
 0x3ba   : > { %v2709_v50 = vpop.eup %2708 }
 0x3bb   : > { %v2711_v51 = vpop.eup %2710  ;;  %v2262_v52 = vadd.f32 1.0, %v2709_v50 }
 0x3bc   : > { %v2263_v40 = vadd.f32 1.0, %v2711_v51 }
 0x3bd   : > { %2712 = vrcp.f32 %v2262_v52 }
 0x3be   : > { %2714 = vrcp.f32 %v2263_v40 }
 0x3c7   : > { %v2713_v58 = vpop.eup %2712 }
 0x3c8   : > { %v2715_v46 = vpop.eup %2714  ;;  %v2279_v6 = vrot.slane %v2713_v58, %v2278_v53 }
 0x3c9   : > { %v2283_v59 = vrot.slane %v2715_v46, %v2278_v53 }
 0x3ca   : > { %v2284_v60 = vmul.f32 %v2279_v6, %v2268_v54  ;;  %v2286_v8 = vmul.f32 %v2279_v6, %v2270_v56  ;;  %v2288_v61 = vmul.f32 %v2279_v6, %v2272_v55  ;;  %v2290_v62 = vmul.f32 %v2279_v6, %v2274_v57 }
 0x3cb   : > { %v2285_v47 = vmul.f32 %v2283_v59, %v2269_v28  ;;  %v2287_v63 = vmul.f32 %v2283_v59, %v2271_v0  ;;  %v2289_v1 = vmul.f32 %v2283_v59, %v2273_v35  ;;  %v2291_v48 = vmul.f32 %v2283_v59, %v2275_v3 }
 0x3cc   : > { %v2292_v4 = vadd.f32 %v2284_v60, %v3075_v10  ;;  %v2294_v7 = vadd.f32 %v2286_v8, %v3083_v14  ;;  %v2296_v9 = vadd.f32 %v2288_v61, %v3089_v17  ;;  %v2298_v2 = vadd.f32 %v2290_v62, %v3095_v20 }
 0x3cd   : > { %v2293_v5 = vadd.f32 %v2285_v47, %v3077_v11  ;;  %v2295_v12 = vadd.f32 %v2287_v63, %v3085_v15  ;;  %v2297_v31 = vadd.f32 %v2289_v1, %v3091_v18  ;;  %v2299_v13 = vadd.f32 %v2291_v48, %v3097_v21 }
 0x3ce   : > { %v2300_v16 = vmax.f32 %v2292_v4, 0.0  ;;  %v2302_v19 = vmax.f32 %v2294_v7, 0.0  ;;  %v2304_v22 = vmax.f32 %v2296_v9, 0.0  ;;  %v2306_v23 = vmax.f32 %v2298_v2, 0.0 }
 0x3cf   : > { %v2301_v10 = vmax.f32 %v2293_v5, 0.0  ;;  %v2303_v11 = vmax.f32 %v2295_v12, 0.0  ;;  %v2305_v14 = vmax.f32 %v2297_v31, 0.0  ;;  %v2307_v15 = vmax.f32 %v2299_v13, 0.0 }
 0x3d0   : > { %2308 = vst [vmem:[%s228_s8] sm:$0xff] %v2300_v16  ;;  %2310 = vst [vmem:[%s228_s8 + $0x10] sm:$0xff] %v2302_v19 }
 0x3d1   : > { %2312 = vst [vmem:[%s228_s8 + $0x20] sm:$0xff] %v2304_v22  ;;  %2314 = vst [vmem:[%s228_s8 + $0x30] sm:$0xff] %v2306_v23 }
 0x3d2   : > { %2309 = vst [vmem:[%s228_s8 + $0x8] sm:$0xff] %v2301_v10  ;;  %2311 = vst [vmem:[%s228_s8 + $0x18] sm:$0xff] %v2303_v11 }
 0x3d3   : > { %2313 = vst [vmem:[%s228_s8 + $0x28] sm:$0xff] %v2305_v14  ;;  %2315 = vst [vmem:[%s228_s8 + $0x38] sm:$0xff] %v2307_v15 }
 0x3d4   : > { %2789 = shalt.err (!%p2786_p11)
}
 0x3d5   : > { %s2790_s20 = scalar_lea.hbm %s3302_s27, 1024  ;;  %s2794_s5 = scalar_lea.hbm %s3351_s3, 2048 }
 0x3d6   : > { %p2791_p3 = scmp.ne.s32.totalorder %s3302_s27, %s2790_s20  ;;  %p2795_p2 = scmp.lt.u32.totalorder %s3302_s27, %s3351_s3 }
 0x3d7   : > { %p2796_p4 = scmp.lt.u32.totalorder %s2794_s5, %s2790_s20  ;;  %p2798_p13 = scmp.lt.u32.totalorder %s2790_s20, %s3302_s27 }
 0x3d8   : > { %p2792_p8 = pnand %p2791_p3, %p3361_p1 }
 0x3d9   : > { %p2797_p6 = por %p2796_p4, %p2795_p2 }
 0x3da   : > { %p2793_p0 = pneg %p2792_p8 }
 0x3db   : > { %p2799_p12 = por %p2798_p13, %p2797_p6 }
 0x3dd   : > { %p2800_p10 = pnand %p2799_p12, %p2793_p0 }
 0x3df   : > { %2803 = shalt.err (!%p2800_p10)
}
 0x3e0   : > { %s2856_s19 = smov 256   ;;  %s2857_s22 = smov 16  }
 0x3e1   : > { %2645 = dma.vmem_to_hbm [thread:$0]  (%p3361_p1), %s3304_s7, 1024, %s3302_s27, %s2317_s26, %s2856_s19, %s2856_s19, %s2857_s22  }
 0x3e2 PF: > { %s2345_s8 = sand.u32 1, %s2834_s12   ;;  %p3362_p5 = scmp.ne.s32.totalorder %s3357_s25, 0 }
 0x3e3   : > { %p3363_p7 = scmp.ge.s32.totalorder %s2846_s15, 2  ;;  %s2346_s16 = scalar_lea.sflag [#allocation4], %s2345_s8 }
 0x3e5   : > { %p2655_p9 = pnand %p3363_p7, %p3362_p5 }
 0x3e7   : > { %2829 = dma.done.wait (!%p2655_p9), %s2346_s16, 1024  }
 0x3e8   : > { %2831 = vsyncadd (!%p2655_p9), %s2346_s16, 4294966272  ;;  %p19_p11 = scmp.ge.s32.totalorder %s2903_s18, 4   ;;  %s3364_s12 = smov %s2838_s13 }
 0x3e9   : > { %s3365_s13 = smov %s2842_s14  ;;  %s3366_s14 = smov %s2915_s21 }
 0x3ea   : > { %s3367_s15 = smov %s2903_s18  ;;  %21 = sbr.rel (!%p19_p11) target bundleno = 7 (0x7), region = 90 }
 0x3f1   :  { %2351 = vsyncpa [#allocation3], 1 }
 0x3f2   :  { %2353 = vsyncpa [#allocation3 + $0x1], 1 }
 0x3f3   :  { %2354 = vsyncpa [#allocation6], 1 }
 0x3f4   :  { %2356 = vsyncpa [#allocation6 + $0x1], 1 }
 0x3f5   :  { %2357 = vsyncpa [#allocation4], 1 }
 0x3f6   :  { %2359 = vsyncpa [#allocation4 + $0x1], 1 }

</bundles_post_ra>
